<compile_context>
chip_gen: v5e
topology: v5e:2x2
jax: 0.10.0
libtpu: 0.0.40
codegen_flags: <defaults>
</compile_context>

<pallas_src>
import math

import jax
import jax.numpy as jnp
from jax.experimental import pallas as pl
from jax.experimental.pallas import tpu as pltpu


def _round_up(x, m):
    return ((x + m - 1) // m) * m


def _linear_kernel(x_ref, w_ref, b_ref, o_ref, acc_ref):
    # x_ref: (tb, tk)   w_ref: (tk, Np)   b_ref: (1, Np)
    # o_ref: (tb, Np)   acc_ref: VMEM (tb, Np) f32 accumulator
    k = pl.program_id(1)

    @pl.when(k == 0)
    def _():
        acc_ref[...] = jnp.zeros_like(acc_ref)

    acc_ref[...] += jnp.dot(
        x_ref[...], w_ref[...], preferred_element_type=jnp.float32
    )

    @pl.when(k == pl.num_programs(1) - 1)
    def _():
        o_ref[...] = (acc_ref[...] + b_ref[...]).astype(o_ref.dtype)


def algorithm_predict(x_nchw, weight, bias, *, k_tile=512):
    """Forward pass: flatten NCHW input, tiled linear classifier head via Pallas."""
    B = x_nchw.shape[0]
    F = math.prod(x_nchw.shape[1:])          # static Python int
    num_classes = weight.shape[1]

    # Lane-dense output: pad the classifier dim to a multiple of 128.
    N_pad = _round_up(num_classes, 128)
    # Reduction tile: multiple of 128, capped at k_tile; pad F to a multiple.
    tk = min(k_tile, _round_up(F, 128))
    F_pad = _round_up(F, tk)
    # Batch tile: shard B across the parallel grid axis when it splits cleanly
    # into sublane-aligned tiles; otherwise keep the whole (small) batch.
    if B >= 8 and B % 8 == 0:
        tb = min(B, 256)
        while B % tb != 0:
            tb //= 2
    else:
        tb = B

    x_flat = x_nchw.reshape(B, F)            # glue reshape in plain JAX
    if F_pad != F:
        x_flat = jnp.pad(x_flat, ((0, 0), (0, F_pad - F)))
        w_p = jnp.pad(weight, ((0, F_pad - F), (0, N_pad - num_classes)))
    else:
        w_p = jnp.pad(weight, ((0, 0), (0, N_pad - num_classes)))
    b_p = jnp.pad(bias.reshape(1, num_classes),
                  ((0, 0), (0, N_pad - num_classes)))

    grid = (B // tb, F_pad // tk)

    out = pl.pallas_call(
        _linear_kernel,
        out_shape=jax.ShapeDtypeStruct((B, N_pad), x_flat.dtype),
        grid=grid,
        in_specs=[
            pl.BlockSpec((tb, tk), lambda i, k: (i, k)),
            pl.BlockSpec((tk, N_pad), lambda i, k: (k, 0)),
            pl.BlockSpec((1, N_pad), lambda i, k: (0, 0)),
        ],
        out_specs=pl.BlockSpec((tb, N_pad), lambda i, k: (i, 0)),
        scratch_shapes=[pltpu.VMEM((tb, N_pad), jnp.float32)],
        compiler_params=pltpu.CompilerParams(
            dimension_semantics=("parallel", "arbitrary"),
        ),
        cost_estimate=pl.CostEstimate(
            flops=2 * B * F * num_classes,
            transcendentals=0,
            bytes_accessed=4 * (B * F + F * num_classes + B * num_classes),
        ),
    )(x_flat, w_p, b_p)

    # Drop the lane padding in plain JAX.
    return out[:, :num_classes]


class Algorithm:
    """JAX/Pallas port of the abstract Algorithm base class."""

    def __init__(self, num_classes, num_domains, hparams, in_features, key):
        self.num_classes = num_classes
        self.num_domains = num_domains
        self.hparams = hparams
        k_w, k_b = jax.random.split(key)
        # Deterministic synthetic init (no checkpoint load).
        scale = 1.0 / jnp.sqrt(jnp.float32(in_features))
        self.weight = (
            jax.random.normal(k_w, (in_features, num_classes), jnp.float32) * scale
        )
        self.bias = jax.random.normal(k_b, (num_classes,), jnp.float32) * 0.01

    def predict(self, x):
        return algorithm_predict(x, self.weight, self.bias)

    def forward(self, x):
        return self.predict(x)

    __call__ = forward


if __name__ == "__main__":
    key = jax.random.PRNGKey(0)
    k_x, k_p = jax.random.split(key)

    # Small shapes consistent with an image-classification forward.
    B, C, H, W = 2, 4, 16, 16
    num_classes = 7
    num_domains = 3
    hparams = {"optimizer": "adam", "lr": 1e-3, "weight_decay": 0.0}

    x = jax.random.normal(k_x, (B, C, H, W), jnp.float32)

    algo = Algorithm(num_classes, num_domains, hparams,
                     in_features=C * H * W, key=k_p)

    logits = algo(x)
    logits = jax.block_until_ready(logits)

    # Cross-check against plain JAX reference of the same concrete predict().
    ref = x.reshape(B, -1) @ algo.weight + algo.bias
    assert logits.shape == (B, num_classes)
    assert jnp.allclose(logits, ref, atol=1e-4, rtol=1e-4)

    print("KERNEL_OK")
</pallas_src>

<mosaic_0001>
module attributes {stable_mosaic.version = 11 : i64} {
  func.func @_linear_kernel(%arg0: i32, %arg1: i32, %arg2: memref<2x512xf32, #tpu.memory_space<vmem>>, %arg3: memref<512x128xf32, #tpu.memory_space<vmem>>, %arg4: memref<1x128xf32, #tpu.memory_space<vmem>>, %arg5: memref<2x128xf32, #tpu.memory_space<vmem>>, %arg6: memref<2x128xf32, #tpu.memory_space<vmem>>) attributes {dimension_semantics = [#tpu.dimension_semantics<parallel>, #tpu.dimension_semantics<arbitrary>], iteration_bounds = array<i64: 1, 2>, scalar_prefetch = 0 : i64, scratch_operands = 1 : i64, tpu.core_type = #tpu.core_type<tc>, window_params = [{transform_indices = @transform_0, window_bounds = array<i64: 2, 512>}, {transform_indices = @transform_1, window_bounds = array<i64: 512, 128>}, {pipeline_mode = #tpu.pipeline_mode<synchronous>, transform_indices = @transform_2, window_bounds = array<i64: 1, 128>}, {transform_indices = @transform_3, window_bounds = array<i64: 2, 128>}]} {
    %c0_i32 = arith.constant 0 : i32
    %0 = arith.cmpi eq, %arg1, %c0_i32 : i32
    %1 = arith.extui %0 : i1 to i32
    %c0_i32_0 = arith.constant 0 : i32
    %2 = arith.cmpi ne, %1, %c0_i32_0 : i32
    scf.if %2 {
      %cst_9 = arith.constant 0.000000e+00 : f32
      %12 = vector.broadcast %cst_9 : f32 to vector<2x128xf32>
      %c0_10 = arith.constant 0 : index
      %c0_11 = arith.constant 0 : index
      %13 = vector.load %arg6[%c0_10, %c0_11] : memref<2x128xf32, #tpu.memory_space<vmem>>, vector<2x128xf32>
      tpu.vector_store %arg6[%c0_10, %c0_11], %12 {strides = array<i32>} : memref<2x128xf32, #tpu.memory_space<vmem>>, vector<2x128xf32>,
    } else {
    }
    %c0 = arith.constant 0 : index
    %c0_1 = arith.constant 0 : index
    %3 = vector.load %arg6[%c0, %c0_1] : memref<2x128xf32, #tpu.memory_space<vmem>>, vector<2x128xf32>
    %c0_2 = arith.constant 0 : index
    %c0_3 = arith.constant 0 : index
    %4 = vector.load %arg2[%c0_2, %c0_3] : memref<2x512xf32, #tpu.memory_space<vmem>>, vector<2x512xf32>
    %c0_4 = arith.constant 0 : index
    %c0_5 = arith.constant 0 : index
    %5 = vector.load %arg3[%c0_4, %c0_5] : memref<512x128xf32, #tpu.memory_space<vmem>>, vector<512x128xf32>
    %cst = arith.constant dense<0.000000e+00> : vector<2x128xf32>
    %6 = tpu.matmul %4, %5, %cst {dimension_numbers = #tpu.dot_dimension_numbers<[1], [0], [0], [1], [0, 0, 1, 1], [], []>} : vector<2x512xf32>, vector<512x128xf32>, vector<2x128xf32> -> vector<2x128xf32>
    %7 = arith.addf %3, %6 : vector<2x128xf32>
    %c0_6 = arith.constant 0 : index
    %c0_7 = arith.constant 0 : index
    %8 = vector.load %arg6[%c0_6, %c0_7] : memref<2x128xf32, #tpu.memory_space<vmem>>, vector<2x128xf32>
    tpu.vector_store %arg6[%c0_6, %c0_7], %7 {strides = array<i32>} : memref<2x128xf32, #tpu.memory_space<vmem>>, vector<2x128xf32>,
    %c1_i32 = arith.constant 1 : i32
    %9 = arith.cmpi eq, %arg1, %c1_i32 : i32
    %10 = arith.extui %9 : i1 to i32
    %c0_i32_8 = arith.constant 0 : i32
    %11 = arith.cmpi ne, %10, %c0_i32_8 : i32
    scf.if %11 {
      %c0_9 = arith.constant 0 : index
      %c0_10 = arith.constant 0 : index
      %12 = vector.load %arg6[%c0_9, %c0_10] : memref<2x128xf32, #tpu.memory_space<vmem>>, vector<2x128xf32>
      %c0_11 = arith.constant 0 : index
      %c0_12 = arith.constant 0 : index
      %13 = vector.load %arg4[%c0_11, %c0_12] : memref<1x128xf32, #tpu.memory_space<vmem>>, vector<1x128xf32>
      %14 = vector.broadcast %13 : vector<1x128xf32> to vector<2x128xf32>
      %15 = arith.addf %12, %14 : vector<2x128xf32>
      %c0_13 = arith.constant 0 : index
      %c0_14 = arith.constant 0 : index
      %16 = vector.load %arg5[%c0_13, %c0_14] : memref<2x128xf32, #tpu.memory_space<vmem>>, vector<2x128xf32>
      tpu.vector_store %arg5[%c0_13, %c0_14], %15 {strides = array<i32>} : memref<2x128xf32, #tpu.memory_space<vmem>>, vector<2x128xf32>,
    } else {
    }
    return
  }
  func.func @transform_0(%arg0: i32, %arg1: i32) -> (i32, i32) {
    %c0_i32 = arith.constant 0 : i32
    return %arg0, %arg1 : i32, i32
  }
  func.func @transform_1(%arg0: i32, %arg1: i32) -> (i32, i32) {
    %c0_i32 = arith.constant 0 : i32
    %c0_i32_0 = arith.constant 0 : i32
    return %arg1, %c0_i32 : i32, i32
  }
  func.func @transform_2(%arg0: i32, %arg1: i32) -> (i32, i32) {
    %c0_i32 = arith.constant 0 : i32
    %c0_i32_0 = arith.constant 0 : i32
    %c0_i32_1 = arith.constant 0 : i32
    return %c0_i32, %c0_i32_0 : i32, i32
  }
  func.func @transform_3(%arg0: i32, %arg1: i32) -> (i32, i32) {
    %c0_i32 = arith.constant 0 : i32
    %c0_i32_0 = arith.constant 0 : i32
    return %arg0, %c0_i32 : i32, i32
  }
}

</mosaic_0001>

<bundles_post_ra>
// kernel: tpu_custom_call.1
= control target key start
LH: loop header
LB: loop body
LE: loop exit
PB: predicated region body
PF: predicated region fallthrough
CT: control target
= control target key end

     0   :  { %8 = vsyncpa [#allocation4], 0  ;;  %s963_s0 = inlined_call_operand.hbm [shape: f32[2,1024], index: 0, kind: input, shape index: {}]   ;;  %s964_s1 = inlined_call_operand.hbm [shape: f32[1024,128], index: 1, kind: input, shape index: {}]   ;;  %s965_s2 = inlined_call_operand.vmem [shape: f32[1,128], index: 2, kind: input, shape index: {}]   ;;  %s966_s3 = inlined_call_operand.hbm [shape: f32[2,128], index: 3, kind: output, shape index: {}]  }
   0x1   :  { %10 = vsyncpa [#allocation4 + $0x1], 0 }
   0x2   :  { %11 = vsyncpa [#allocation7], 0 }
   0x3   :  { %13 = vsyncpa [#allocation7 + $0x1], 0 }
   0x4   :  { %14 = vsyncpa [#allocation5], 0  ;;  %s777_s12 = smov 0   ;;  %s779_s13 = smov 0  }
   0x5   :  { %s781_s14 = smov 0   ;;  %s783_s15 = smov 0  }
   0x6   :  { %s785_s16 = smov 0   ;;  %s787_s17 = smov 0  }
   0x7 LB: > { %s514_s18 = sadd.s32 4294967295, %s751_s17   ;;  %s29_s19 = sadd.s32 1, %s747_s16  ;;  %s751_s17 = sphi %s787_s17, %s20_s17   ;;  %s747_s16 = sphi %s785_s16, %s974_s16   ;;  %s743_s15 = sphi %s783_s15, %s973_s15   ;;  %s739_s14 = sphi %s781_s14, %s972_s14   ;;  %s735_s13 = sphi %s779_s13, %s971_s13   ;;  %s731_s12 = sphi %s777_s12, %s970_s12  }
   0x8   : > { %p30_p0 = scmp.ge.s32.totalorder %s29_s19, 2  ;;  %s41_s20 = sadd.s32 1, %s739_s14 }
   0x9   : > { %p48_p1 = scmp.ne.s32.totalorder %s739_s14, %s735_s13  ;;  %p49_p2 = scmp.eq.s32.totalorder %s751_s17, 0 }
   0xa   : > { %s976_s19 = smov (%p30_p0, %s29_s19), 0  ;;  %p54_p4 = scmp.ne.s32.totalorder %s735_s13, %s731_s12 }
   0xb   : > { %p813_p3 = por %p49_p2, %p48_p1  ;;  %s37_s22 = ssub.s32 %s747_s16, %s976_s19 }
   0xc   : > { %p55_p5 = scmp.eq.s32.totalorder %s514_s18, 0  ;;  %p39_p6 = scmp.eq.s32.totalorder %s37_s22, 0 }
   0xd   : > { %p549_p8 = scmp.lt.s32.totalorder %s751_s17, 2  ;;  %s831_s25 = sand.u32 1, %s739_s14  }
   0xe   : > { %p822_p7 = por %p55_p5, %p54_p4  ;;  %s532_s26 = sshll.u32 %s747_s16, 3 }
   0xf   : > { %s828_s24 = scalar_select %p39_p6, %s739_s14, %s41_s20  }
  0x10   : > { %s517_s27 = sshll.u32 %s831_s25, 3  ;;  %s165_s30 = scalar_lea.hbm %s963_s0, %s532_s26 }
  0x11   : > { %s167_s4 = sshll.u32 %s165_s30, 4  ;;  %s158_s5 = scalar_lea.vmem [#allocation3], %s517_s27  ;;  %s168_s4 = int_to_ptr.hbm [resolvable:$true] %s167_s4 }
  0x12   : > { %s169_s6 = sshll.u32 %s158_s5, 4  ;;  %p840_p9 = pnand %p549_p8, %p813_p3  ;;  %s170_s6 = int_to_ptr.vmem [resolvable:$true] %s169_s6 }
  0x13   : > { %p523_p10 = scmp.ge.s32.totalorder %s751_s17, 1  ;;  %p196_p11 = scmp.lt.s32.totalorder %s751_s17, 3 }
  0x14   : > { %s520_s8 = sshll.u32 %s831_s25, 9  ;;  %s155_s9 = scalar_lea.sflag [#allocation4], %s831_s25 }
  0x15   : > { %545 = dma.hbm_to_vmem [thread:$0]  (!%p840_p9), %s168_s4, 128, %s170_s6, %s155_s9  }
  0x16   : > { %p197_p12 = pnand %p523_p10, %p196_p11  ;;  %s533_s10 = sshll.u32 %s747_s16, 9 }
  0x17   : > { %s180_s11 = scalar_lea.vmem [#allocation6], %s520_s8  ;;  %s185_s21 = scalar_lea.hbm %s964_s1, %s533_s10 }
  0x18   : > { %s188_s12 = sshll.u32 %s180_s11, 4  ;;  %s186_s26 = sshll.u32 %s185_s21, 4  ;;  %s189_s12 = int_to_ptr.vmem [resolvable:$true] %s188_s12  ;;  %s187_s26 = int_to_ptr.hbm [resolvable:$true] %s186_s26 }
  0x19   : > { %s177_s27 = scalar_lea.sflag [#allocation7], %s831_s25  ;;  %s753_s28 = smov 128  }
  0x1a   : > { %s754_s29 = smov 8   ;;  %200 = sbr.rel (%p197_p12) target bundleno = 232 (0xe8), region = 32 }
  0x1b   : > { %548 = dma.hbm_to_vmem [thread:$0]  (!%p840_p9), %s187_s26, 8192, %s189_s12, %s177_s27, %s753_s28, %s753_s28, %s754_s29  }
  0x1c   : > { %s202_s30 = sand.u32 (!%p197_p12), 1, %s735_s13  }
  0x1d   : > { %s524_s4 = sshll.u32 (!%p197_p12), %s202_s30, 3  ;;  %s203_s5 = scalar_lea.sflag (!%p197_p12), [#allocation4], %s202_s30 }
  0x1e   : > { %s858_s6 = scalar_lea.vmem (!%p197_p12), [#allocation3], %s524_s4 }
  0x1f   : > { %718 = dma.done.wait (%p822_p7), %s203_s5, 128  }
  0x20   : > { %720 = vsyncadd (%p822_p7), %s203_s5, 4294967168  ;;  %s525_s8 = sshll.u32 %s202_s30, 9  ;;  %s213_s25 = scalar_lea.sflag [#allocation7], %s202_s30 }
  0x21   : > { %s864_s9 = scalar_lea.vmem [#allocation6], %s525_s8 }
  0x22   : > { %722 = dma.done.wait (%p822_p7), %s213_s25, 8192  }
  0x23   : > { %724 = vsyncadd (%p822_p7), %s213_s25, 4294959104  ;;  %p526_p13 = scmp.ne.s32.totalorder %s743_s15, 0 }
  0x25   : > { %245 = sbr.rel (%p526_p13) target bundleno = 44 (0x2c), region = 44 }
  0x2a   : > { %v755_v0 = vmov 0.0  }
  0x2b   : > { %246 = vst [vmem:[#allocation2] sm:$0x3] %v755_v0 }
  0x2c PF: > { %v296_v1 = vld [vmem:[%s864_s9 + $0x178] sm:$0xff]  ;;  %v295_v2 = vld [vmem:[%s864_s9 + $0x170] sm:$0xff]  ;;  %v294_v6 = vld [vmem:[%s864_s9 + $0x168] sm:$0xff]  ;;  %p527_p0 = scmp.ne.s32.totalorder %s743_s15, 1 }
  0x2d   : > { %v312_v3 = vld [vmem:[%s864_s9 + $0x1f8] sm:$0xff]  ;;  %363 = vmatpush.msra.mxu2 %v296_v1  ;;  %v311_v7 = vld [vmem:[%s864_s9 + $0x1f0] sm:$0xff]  ;;  %v310_v10 = vld [vmem:[%s864_s9 + $0x1e8] sm:$0xff] }
  0x2e   : > { %383 = vmatpush.msra.mxu3 %v312_v3  ;;  %v264_v4 = vld [vmem:[%s864_s9 + $0x78] sm:$0xff]  ;;  %v263_v8 = vld [vmem:[%s864_s9 + $0x70] sm:$0xff]  ;;  %v262_v11 = vld [vmem:[%s864_s9 + $0x68] sm:$0xff] }
  0x2f   : > { %v280_v5 = vld [vmem:[%s864_s9 + $0xf8] sm:$0xff]  ;;  %323 = vmatpush.msra.mxu0 %v264_v4  ;;  %v279_v9 = vld [vmem:[%s864_s9 + $0xf0] sm:$0xff]  ;;  %364 = vmatpush.msra.mxu2 %v295_v2  ;;  %v293_v12 = vld [vmem:[%s864_s9 + $0x160] sm:$0xff] }
  0x30   : > { %343 = vmatpush.msra.mxu1 %v280_v5  ;;  %384 = vmatpush.msra.mxu3 %v311_v7  ;;  %v278_v13 = vld [vmem:[%s864_s9 + $0xe8] sm:$0xff]  ;;  %v309_v14 = vld [vmem:[%s864_s9 + $0x1e0] sm:$0xff]  ;;  %v292_v17 = vld [vmem:[%s864_s9 + $0x158] sm:$0xff] }
  0x31   : > { %324 = vmatpush.msra.mxu0 %v263_v8  ;;  %365 = vmatpush.msra.mxu2 %v294_v6  ;;  %v261_v15 = vld [vmem:[%s864_s9 + $0x60] sm:$0xff]  ;;  %v308_v18 = vld [vmem:[%s864_s9 + $0x1d8] sm:$0xff]  ;;  %v291_v21 = vld [vmem:[%s864_s9 + $0x150] sm:$0xff] }
  0x32   : > { %344 = vmatpush.msra.mxu1 %v279_v9  ;;  %385 = vmatpush.msra.mxu3 %v310_v10  ;;  %v277_v16 = vld [vmem:[%s864_s9 + $0xe0] sm:$0xff]  ;;  %v260_v19 = vld [vmem:[%s864_s9 + $0x58] sm:$0xff]  ;;  %v307_v22 = vld [vmem:[%s864_s9 + $0x1d0] sm:$0xff] }
  0x33   : > { %325 = vmatpush.msra.mxu0 %v262_v11  ;;  %366 = vmatpush.msra.mxu2 %v293_v12  ;;  %v276_v20 = vld [vmem:[%s864_s9 + $0xd8] sm:$0xff]  ;;  %v259_v23 = vld [vmem:[%s864_s9 + $0x50] sm:$0xff]  ;;  %v290_v25 = vld [vmem:[%s864_s9 + $0x148] sm:$0xff] }
  0x34   : > { %345 = vmatpush.msra.mxu1 %v278_v13  ;;  %386 = vmatpush.msra.mxu3 %v309_v14  ;;  %v275_v24 = vld [vmem:[%s864_s9 + $0xd0] sm:$0xff]  ;;  %v306_v26 = vld [vmem:[%s864_s9 + $0x1c8] sm:$0xff]  ;;  %v289_v29 = vld [vmem:[%s864_s9 + $0x140] sm:$0xff] }
  0x35   : > { %326 = vmatpush.msra.mxu0 %v261_v15  ;;  %367 = vmatpush.msra.mxu2 %v292_v17  ;;  %v258_v27 = vld [vmem:[%s864_s9 + $0x48] sm:$0xff]  ;;  %v305_v30 = vld [vmem:[%s864_s9 + $0x1c0] sm:$0xff]  ;;  %v288_v33 = vld [vmem:[%s864_s9 + $0x138] sm:$0xff] }
  0x36   : > { %346 = vmatpush.msra.mxu1 %v277_v16  ;;  %387 = vmatpush.msra.mxu3 %v308_v18  ;;  %v274_v28 = vld [vmem:[%s864_s9 + $0xc8] sm:$0xff]  ;;  %v257_v31 = vld [vmem:[%s864_s9 + $0x40] sm:$0xff]  ;;  %v304_v34 = vld [vmem:[%s864_s9 + $0x1b8] sm:$0xff] }
  0x37   : > { %327 = vmatpush.msra.mxu0 %v260_v19  ;;  %368 = vmatpush.msra.mxu2 %v291_v21  ;;  %v273_v32 = vld [vmem:[%s864_s9 + $0xc0] sm:$0xff]  ;;  %v256_v35 = vld [vmem:[%s864_s9 + $0x38] sm:$0xff]  ;;  %v287_v37 = vld [vmem:[%s864_s9 + $0x130] sm:$0xff] }
  0x38   : > { %347 = vmatpush.msra.mxu1 %v276_v20  ;;  %388 = vmatpush.msra.mxu3 %v307_v22  ;;  %v272_v36 = vld [vmem:[%s864_s9 + $0xb8] sm:$0xff]  ;;  %v303_v38 = vld [vmem:[%s864_s9 + $0x1b0] sm:$0xff]  ;;  %v286_v41 = vld [vmem:[%s864_s9 + $0x128] sm:$0xff] }
  0x39   : > { %328 = vmatpush.msra.mxu0 %v259_v23  ;;  %369 = vmatpush.msra.mxu2 %v290_v25  ;;  %v255_v39 = vld [vmem:[%s864_s9 + $0x30] sm:$0xff]  ;;  %v302_v42 = vld [vmem:[%s864_s9 + $0x1a8] sm:$0xff]  ;;  %v285_v46 = vld [vmem:[%s864_s9 + $0x120] sm:$0xff] }
  0x3a   : > { %348 = vmatpush.msra.mxu1 %v275_v24  ;;  %389 = vmatpush.msra.mxu3 %v306_v26  ;;  %v271_v40 = vld [vmem:[%s864_s9 + $0xb0] sm:$0xff]  ;;  %v254_v43 = vld [vmem:[%s864_s9 + $0x28] sm:$0xff]  ;;  %v301_v47 = vld [vmem:[%s864_s9 + $0x1a0] sm:$0xff] }
  0x3b   : > { %329 = vmatpush.msra.mxu0 %v258_v27  ;;  %370 = vmatpush.msra.mxu2 %v289_v29  ;;  %v270_v44 = vld [vmem:[%s864_s9 + $0xa8] sm:$0xff]  ;;  %v248_v45 = vld [vmem:[%s858_s6] sm:$0xff]  ;;  %v253_v48 = vld [vmem:[%s864_s9 + $0x20] sm:$0xff] }
  0x3c   : > { %349 = vmatpush.msra.mxu1 %v274_v28  ;;  %390 = vmatpush.msra.mxu3 %v305_v30  ;;  %314 = vst [vmem:[#allocation1] ss:$4 sm:$0xff] %v248_v45  ;;  %v269_v49 = vld [vmem:[%s864_s9 + $0xa0] sm:$0xff]  ;;  %v284_v50 = vld [vmem:[%s864_s9 + $0x118] sm:$0xff]  ;;  %v283_v54 = vld [vmem:[%s864_s9 + $0x110] sm:$0xff] }
  0x3d   : > { %330 = vmatpush.msra.mxu0 %v257_v31  ;;  %371 = vmatpush.msra.mxu2 %v288_v33  ;;  %v300_v51 = vld [vmem:[%s864_s9 + $0x198] sm:$0xff]  ;;  %v299_v55 = vld [vmem:[%s864_s9 + $0x190] sm:$0xff]  ;;  %v282_v58 = vld [vmem:[%s864_s9 + $0x108] sm:$0xff] }
  0x3e   : > { %350 = vmatpush.msra.mxu1 %v273_v32  ;;  %391 = vmatpush.msra.mxu3 %v304_v34  ;;  %v252_v52 = vld [vmem:[%s864_s9 + $0x18] sm:$0xff]  ;;  %v251_v56 = vld [vmem:[%s864_s9 + $0x10] sm:$0xff]  ;;  %v298_v59 = vld [vmem:[%s864_s9 + $0x188] sm:$0xff] }
  0x3f   : > { %331 = vmatpush.msra.mxu0 %v256_v35  ;;  %372 = vmatpush.msra.mxu2 %v287_v37  ;;  %v268_v53 = vld [vmem:[%s864_s9 + $0x98] sm:$0xff]  ;;  %v267_v57 = vld [vmem:[%s864_s9 + $0x90] sm:$0xff]  ;;  %v250_v60 = vld [vmem:[%s864_s9 + $0x8] sm:$0xff] }
  0x40   : > { %351 = vmatpush.msra.mxu1 %v272_v36  ;;  %392 = vmatpush.msra.mxu3 %v303_v38  ;;  %v266_v61 = vld [vmem:[%s864_s9 + $0x88] sm:$0xff]  ;;  %v281_v62 = vld [vmem:[%s864_s9 + $0x100] sm:$0xff] }
  0x41   : > { %332 = vmatpush.msra.mxu0 %v255_v39  ;;  %373 = vmatpush.msra.mxu2 %v286_v41  ;;  %v297_v63 = vld [vmem:[%s864_s9 + $0x180] sm:$0xff]  ;;  %v247_v12 = vld [vmem:[#allocation2] sm:$0x3] }
  0x42   : > { %352 = vmatpush.msra.mxu1 %v271_v40  ;;  %393 = vmatpush.msra.mxu3 %v302_v42  ;;  %v249_v2 = vld [vmem:[%s864_s9] sm:$0xff] }
  0x43   : > { %333 = vmatpush.msra.mxu0 %v254_v43  ;;  %374 = vmatpush.msra.mxu2 %v285_v46  ;;  %v317_v0 = vld.sshfl [vmem:[#allocation1 + $0x10] sm:$0xff pattern:$0x73625140]  ;;  %v318_v1 = vld.sshfl [vmem:[#allocation1 + $0x18] sm:$0xff pattern:$0x73625140] }
  0x44   : > { %353 = vmatpush.msra.mxu1 %v270_v44  ;;  %394 = vmatpush.msra.mxu3 %v301_v47  ;;  %v265_v3 = vld [vmem:[%s864_s9 + $0x80] sm:$0xff]  ;;  %v316_v5 = vld.sshfl [vmem:[#allocation1 + $0x8] sm:$0xff pattern:$0x73625140] }
  0x45   : > { %334 = vmatpush.msra.mxu0 %v253_v48  ;;  %375 = vmatpush.msra.mxu2 %v284_v50  ;;  %v315_v4 = vld.sshfl [vmem:[#allocation1] sm:$0xff pattern:$0x73625140] }
  0x46   : > { %354 = vmatpush.msra.mxu1 %v269_v49  ;;  %395 = vmatpush.msra.mxu3 %v300_v51 }
  0x47   : > { %335 = vmatpush.msra.mxu0 %v252_v52  ;;  %376 = vmatpush.msra.mxu2 %v283_v54 }
  0x48   : > { %355 = vmatpush.msra.mxu1 %v268_v53  ;;  %396 = vmatpush.msra.mxu3 %v299_v55 }
  0x49   : > { %336 = vmatpush.msra.mxu0 %v251_v56  ;;  %377 = vmatpush.msra.mxu2 %v282_v58 }
  0x4a   : > { %356 = vmatpush.msra.mxu1 %v267_v57  ;;  %397 = vmatpush.msra.mxu3 %v298_v59 }
  0x4b   : > { %337 = vmatpush.msra.mxu0 %v250_v60  ;;  %378 = vmatpush.msra.mxu2 %v281_v62 }
  0x4c   : > { %357 = vmatpush.msra.mxu1 %v266_v61  ;;  %398 = vmatpush.msra.mxu3 %v297_v63 }
  0x4d   : > { %379 = vmatmul.f32.vlgmr.msra.gmra.mxu2 %v317_v0  ;;  %399 = vmatmul.f32.vlgmr.msra.gmra.mxu3 %v318_v1 }
  0x4e   : > { %338 = vmatpush.msra.mxu0 %v249_v2  ;;  %358 = vmatpush.msra.mxu1 %v265_v3 }
  0x4f   : > { %339 = vmatmul.f32.vlgmr.msra.gmra.mxu0 %v315_v4  ;;  %359 = vmatmul.f32.vlgmr.msra.gmra.mxu1 %v316_v5 }
  0xcc   : > { %v340_v6 = vpop.f32.mrf.mxu0  ;;  %v360_v7 = vpop.f32.mrf.mxu1 }
  0xcd   : > { %v361_v8 = vadd.f32 %v360_v7, %v340_v6 }
  0xd0   : > { %v380_v9 = vpop.f32.mrf.mxu2  ;;  %v400_v10 = vpop.f32.mrf.mxu3 }
  0xd1   : > { %v381_v11 = vadd.f32 %v380_v9, %v361_v8 }
  0xd3   : > { %v401_v13 = vadd.f32 %v400_v10, %v381_v11  ;;  %408 = sbr.rel (%p527_p0) target bundleno = 226 (0xe2), region = 48 }
  0xd5   : > { %v403_v14 = vadd.f32 %v401_v13, %v247_v12 }
  0xd7   : > { %404 = vst [vmem:[#allocation2] sm:$0x3] %v403_v14 }
  0xd8   : > { %v604_v16 = vld [vmem:[%s965_s2] ss:$0 sm:$0xff] }
  0xde   : > { %v409_v15 = vld [vmem:[#allocation2] sm:$0x3] }
  0xdf   : > { %v414_v17 = vadd.f32 %v604_v16, %v409_v15 }
  0xe1   : > { %415 = vst [vmem:[#allocation8] sm:$0x3] %v414_v17 }
  0xe2 PF: > { %p550_p1 = scmp.eq.s32.totalorder %s514_s18, 1  ;;  %s426_s12 = sshll.u32 %s966_s3, 4  ;;  %s427_s12 = int_to_ptr.hbm [resolvable:$true] %s426_s12 }
  0xe3   : > { %s756_s20 = smov [#allocation8]  }
  0xe4   : > { %s424_s22 = sshll.u32 %s756_s20, 4  ;;  %s425_s22 = int_to_ptr.vmem [resolvable:$true] %s424_s22 }
  0xe5   : > { %539 = dma.vmem_to_hbm [thread:$0]  (%p550_p1), %s425_s22, 32, %s427_s12, [#allocation5]  }
  0xe6   : > { %726 = dma.done.wait (%p550_p1), [#allocation5], 32  }
  0xe7   : > { %728 = vsyncadd (%p550_p1), [#allocation5], 4294967264 }
  0xe8 PF: > { %s20_s17 = sadd.s32 1, %s751_s17   ;;  %s970_s12 = smov %s735_s13 }
  0xe9   : > { %p17_p2 = scmp.ge.s32.totalorder %s20_s17, 4   ;;  %s971_s13 = smov %s739_s14 }
  0xea   : > { %s972_s14 = smov %s828_s24  ;;  %s973_s15 = smov %s747_s16 }
  0xeb   : > { %s974_s16 = smov %s976_s19  ;;  %19 = sbr.rel (!%p17_p2) target bundleno = 7 (0x7), region = 91 }
  0xf0   :  { %440 = vsyncpa [#allocation4], 1 }
  0xf1   :  { %442 = vsyncpa [#allocation4 + $0x1], 1 }
  0xf2   :  { %443 = vsyncpa [#allocation7], 1 }
  0xf3   :  { %445 = vsyncpa [#allocation7 + $0x1], 1 }
  0xf4   :  { %446 = vsyncpa [#allocation5], 1 }
  0xf5   :  { %448 = vsyncpa [#allocation5 + $0x1], 1 }

</bundles_post_ra>
